<compile_context>
chip_gen: v5e
topology: v5e:2x2
jax: 0.10.0
libtpu: 0.0.40
codegen_flags: <defaults>
</compile_context>

<pallas_src>
import functools

import jax
import jax.numpy as jnp
from jax import lax
from jax.experimental import pallas as pl
from jax.experimental.pallas import tpu as pltpu

TM_MAX = 128                    # destination-row tile for in-kernel attention loop
COMPUTE_DTYPE = jnp.bfloat16    # MXU operand dtype (set jnp.float32 on v5e if needed)
NEG_SLOPE = 0.2                 # GATConv LeakyReLU default
MASK_BIAS = -1e30               # additive mask, kept in f32 (never cast to bf16)


def _round_up(v, m):
    return ((v + m - 1) // m) * m


def _full_spec(shape):
    nd = len(shape)
    return pl.BlockSpec(shape, lambda i, _nd=nd: (0,) * _nd)


def _fused_gat_kernel(*refs, n_conv, n_hidden_lin, heads, conv_out_chs,
                      tm, n_tiles, compute_dtype):
    """Whole GAT forward in one kernel; activations never leave VMEM."""
    f32 = jnp.float32
    idx = 0
    adj_ref = refs[idx]; idx += 1                       # (Np, Np) int8
    x_ref = refs[idx]; idx += 1                         # (Np, F0) f32
    conv_p = []
    for _ in range(n_conv):
        conv_p.append(refs[idx:idx + 3]); idx += 3      # w, att([src;dst]), bias
    lin_p = []
    for _ in range(n_hidden_lin):
        lin_p.append(refs[idx:idx + 2]); idx += 2       # BN-folded w, b
    fw_ref, fb_ref = refs[idx], refs[idx + 1]; idx += 2
    out_ref = refs[idx]; idx += 1
    act_ref, sdst_ref = refs[idx], refs[idx + 1]        # VMEM scratch

    # ------------------- GATConv stack (results kept in act_ref) -------------------
    prev_width = x_ref.shape[1]
    for l in range(n_conv):
        w_ref, att_ref, b_ref = conv_p[l]
        c = conv_out_chs[l]
        hc = heads * c
        apply_act = l < n_conv - 1

        src = x_ref[...] if l == 0 else act_ref[:, :prev_width]      # (Np, F_in)
        # node projection: one MXU matmul for all nodes (bf16 operands, f32 acc)
        xp = jnp.dot(src.astype(compute_dtype), w_ref[...].astype(compute_dtype),
                     preferred_element_type=f32)                     # (Np, H*C)

        xp_heads, s_src_rows, s_dst_cols = [], [], []
        for h in range(heads):
            xp_h = xp[:, h * c:(h + 1) * c]                          # (Np, C)
            a_s = att_ref[h:h + 1, :]                                # (1, C)
            a_d = att_ref[heads + h:heads + h + 1, :]                # (1, C)
            # per-destination logit: VPU multiply + lane reduce (column layout)
            s_dst_cols.append(jnp.sum(xp_h * a_d, axis=-1, keepdims=True))   # (Np, 1)
            # per-source logit: tiny [1,C]x[N,C] contraction -> lane-major row
            # (avoids an XLU transpose of a column reduce)
            s_src_rows.append(lax.dot_general(a_s, xp_h, (((1,), (1,)), ((), ())),
                                              preferred_element_type=f32))  # (1, Np)
            xp_heads.append(xp_h.astype(compute_dtype))
        sdst_ref[...] = (jnp.concatenate(s_dst_cols, axis=-1)
                         if heads > 1 else s_dst_cols[0])            # (Np, heads)
        bias_row = b_ref[...]                                        # (1, H*C)

        def process_rows(r, _hc=hc, _xp_heads=xp_heads, _s_src=s_src_rows,
                         _bias=bias_row, _act=apply_act):
            # one tile of destination rows: caps live attention planes at (tm, Np)
            mask = adj_ref[pl.ds(r, tm), :] != 0                     # (tm, Np)
            sdst_blk = sdst_ref[pl.ds(r, tm), :]                     # (tm, heads)
            outs = []
            for h in range(heads):
                e = sdst_blk[:, h:h + 1] + _s_src[h]                 # (tm, Np), f32
                e = jnp.where(e > 0, e, NEG_SLOPE * e)               # LeakyReLU(0.2)
                e = jnp.where(mask, e, MASK_BIAS)
                e_max = jnp.max(e, axis=-1, keepdims=True)
                p = jnp.where(mask, jnp.exp(e - e_max), 0.0)
                denom = jnp.maximum(jnp.sum(p, axis=-1, keepdims=True), 1e-20)
                att = p * pl.reciprocal(denom, approx=True)          # softmax (EUP)
                # attention dropout: identity in eval mode
                outs.append(jnp.dot(att.astype(compute_dtype), _xp_heads[h],
                                    preferred_element_type=f32))     # (tm, C)
            out_tile = outs[0] if heads == 1 else jnp.concatenate(outs, axis=-1)
            out_tile = out_tile + _bias
            if _act:
                out_tile = jnp.maximum(out_tile, 0.0)                # fused relu
            act_ref[pl.ds(r, tm), :_hc] = out_tile

        if n_tiles == 1:
            process_rows(0)                                          # static single tile
        else:
            @pl.loop(0, n_tiles)
            def _(t):
                process_rows(pl.multiple_of(t * tm, tm))

        prev_width = hc

    # ------- fused MLP tail: (linear+BN folded, relu)* + final (lane-padded) linear -------
    h = act_ref[:, :prev_width]
    for j in range(n_hidden_lin):
        w_ref, b_ref = lin_p[j]
        h = jnp.dot(h.astype(compute_dtype), w_ref[...].astype(compute_dtype),
                    preferred_element_type=f32) + b_ref[...]
        # dropout: identity in eval mode
        h = jnp.maximum(h, 0.0)                  # relu
    out_ref[...] = jnp.dot(h.astype(compute_dtype), fw_ref[...].astype(compute_dtype),
                           preferred_element_type=f32) + fb_ref[...]


# ----------------------------- wrapper / pallas_call -----------------------------
def gat_forward(params, x, adj, *, heads=1, eps=1e-5):
    n, _ = x.shape
    conv_p, lin_p, bn_p = params["convs"], params["lins"], params["bns"]
    n_conv, n_lin = len(conv_p), len(lin_p)
    n_hidden_lin = n_lin - 1
    conv_out_chs = tuple(p["out_ch"] for p in conv_p)
    hc_max = heads * max(conv_out_chs)
    d_out = lin_p[-1]["w"].shape[1]
    d_out_pad = _round_up(d_out, 128)             # lane-dense (unmasked) output store

    # pad node count so row tiles stay aligned with (8,128)/int8 packing
    n_pad = _round_up(n, 8)
    if n_pad > TM_MAX:
        n_pad = _round_up(n_pad, TM_MAX)
        tm = TM_MAX
    else:
        tm = n_pad
    n_tiles = n_pad // tm

    x_p = jnp.pad(x.astype(jnp.float32), ((0, n_pad - n), (0, 0)))
    adj_i8 = jnp.pad((adj != 0).astype(jnp.int8),
                     ((0, n_pad - n), (0, n_pad - n)))               # int8: 4x less DMA

    inputs = [adj_i8, x_p]
    for p in conv_p:
        att = jnp.concatenate([p["att_src"], p["att_dst"]], axis=0)  # (2*heads, C)
        inputs += [p["w"], att, p["bias"]]
    for j in range(n_hidden_lin):
        bn = bn_p[j]
        scale = bn["gamma"] * lax.rsqrt(bn["var"] + eps)             # eval-mode BN ...
        shift = bn["beta"] - bn["mean"] * scale
        inputs += [lin_p[j]["w"] * scale,                            # ... folded into W
                   lin_p[j]["b"] * scale + shift]                    # ... and bias
    fw = jnp.pad(lin_p[-1]["w"], ((0, 0), (0, d_out_pad - d_out)))   # lane-pad final lin
    fb = jnp.pad(lin_p[-1]["b"], ((0, 0), (0, d_out_pad - d_out)))
    inputs += [fw, fb]

    kernel = functools.partial(
        _fused_gat_kernel, n_conv=n_conv, n_hidden_lin=n_hidden_lin, heads=heads,
        conv_out_chs=conv_out_chs, tm=tm, n_tiles=n_tiles, compute_dtype=COMPUTE_DTYPE)

    out = pl.pallas_call(
        kernel,
        grid=(1,),
        in_specs=[_full_spec(a.shape) for a in inputs],
        out_specs=_full_spec((n_pad, d_out_pad)),
        out_shape=jax.ShapeDtypeStruct((n_pad, d_out_pad), jnp.float32),
        scratch_shapes=[pltpu.VMEM((n_pad, hc_max), jnp.float32),    # layer activations
                        pltpu.VMEM((n_pad, heads), jnp.float32)],    # per-dst logits
        compiler_params=pltpu.CompilerParams(dimension_semantics=("arbitrary",)),
    )(*inputs)
    return out[:n, :d_out]


# ----------------------------- parameters -----------------------------
def init_params(key, conv_layers, lin_layers, heads):
    params = {"convs": [], "lins": [], "bns": []}
    for i in range(len(conv_layers) - 1):
        f_in, c = conv_layers[i], conv_layers[i + 1]
        key, kw, ks, kd = jax.random.split(key, 4)
        params["convs"].append(dict(
            w=0.2 * jax.random.normal(kw, (f_in, heads * c), jnp.float32),
            att_src=0.2 * jax.random.normal(ks, (heads, c), jnp.float32),
            att_dst=0.2 * jax.random.normal(kd, (heads, c), jnp.float32),
            bias=jnp.zeros((1, heads * c), jnp.float32),
            out_ch=c,
        ))
    for j in range(len(lin_layers) - 1):
        d_in, d_out = lin_layers[j], lin_layers[j + 1]
        key, kw, kb = jax.random.split(key, 3)
        params["lins"].append(dict(
            w=0.2 * jax.random.normal(kw, (d_in, d_out), jnp.float32),
            b=0.05 * jax.random.normal(kb, (1, d_out), jnp.float32),
        ))
        if j < len(lin_layers) - 2:
            # BatchNorm1d defaults: gamma=1, beta=0, running_mean=0, running_var=1
            params["bns"].append(dict(
                gamma=jnp.ones((1, d_out), jnp.float32),
                beta=jnp.zeros((1, d_out), jnp.float32),
                mean=jnp.zeros((1, d_out), jnp.float32),
                var=jnp.ones((1, d_out), jnp.float32),
            ))
    return params


if __name__ == "__main__":
    N = 16                      # number of graph nodes
    HEADS = 1                   # heads>1 with concat=True violates the module's size check
    CONV_LAYERS = [8, 16, 16]
    LIN_LAYERS = [16, 32, 8]

    key = jax.random.PRNGKey(0)
    kx, ks, kd, kp = jax.random.split(key, 4)
    x = jax.random.normal(kx, (N, CONV_LAYERS[0]), jnp.float32)

    # random directed graph: 40 edges (edge_index equivalent) + self loops
    E = 40
    src = jax.random.randint(ks, (E,), 0, N)
    dst = jax.random.randint(kd, (E,), 0, N)
    adj = jnp.zeros((N, N), jnp.float32).at[dst, src].set(1.0)
    adj = adj.at[jnp.arange(N), jnp.arange(N)].set(1.0)   # add_self_loops=True

    params = init_params(kp, CONV_LAYERS, LIN_LAYERS, HEADS)
    out = gat_forward(params, x, adj, heads=HEADS)
    out = jax.block_until_ready(out)

    assert out.shape == (N, LIN_LAYERS[-1]), out.shape
    assert bool(jnp.all(jnp.isfinite(out)))
    print("KERNEL_OK")
</pallas_src>

<mosaic_0001>
module attributes {stable_mosaic.version = 11 : i64} {
  func.func @_fused_gat_kernel(%arg0: i32, %arg1: memref<16x16xi8, #tpu.memory_space<vmem>>, %arg2: memref<16x8xf32, #tpu.memory_space<vmem>>, %arg3: memref<8x16xf32, #tpu.memory_space<vmem>>, %arg4: memref<2x16xf32, #tpu.memory_space<vmem>>, %arg5: memref<1x16xf32, #tpu.memory_space<vmem>>, %arg6: memref<16x16xf32, #tpu.memory_space<vmem>>, %arg7: memref<2x16xf32, #tpu.memory_space<vmem>>, %arg8: memref<1x16xf32, #tpu.memory_space<vmem>>, %arg9: memref<16x32xf32, #tpu.memory_space<vmem>>, %arg10: memref<1x32xf32, #tpu.memory_space<vmem>>, %arg11: memref<32x128xf32, #tpu.memory_space<vmem>>, %arg12: memref<1x128xf32, #tpu.memory_space<vmem>>, %arg13: memref<16x128xf32, #tpu.memory_space<vmem>>, %arg14: memref<16x16xf32, #tpu.memory_space<vmem>>, %arg15: memref<16x1xf32, #tpu.memory_space<vmem>>) attributes {dimension_semantics = [#tpu.dimension_semantics<arbitrary>], iteration_bounds = array<i64: 1>, scalar_prefetch = 0 : i64, scratch_operands = 2 : i64, tpu.core_type = #tpu.core_type<tc>, window_params = [{pipeline_mode = #tpu.pipeline_mode<synchronous>, transform_indices = @transform_0, window_bounds = array<i64: 16, 16>}, {pipeline_mode = #tpu.pipeline_mode<synchronous>, transform_indices = @transform_1, window_bounds = array<i64: 16, 8>}, {pipeline_mode = #tpu.pipeline_mode<synchronous>, transform_indices = @transform_2, window_bounds = array<i64: 8, 16>}, {pipeline_mode = #tpu.pipeline_mode<synchronous>, transform_indices = @transform_3, window_bounds = array<i64: 2, 16>}, {pipeline_mode = #tpu.pipeline_mode<synchronous>, transform_indices = @transform_4, window_bounds = array<i64: 1, 16>}, {pipeline_mode = #tpu.pipeline_mode<synchronous>, transform_indices = @transform_5, window_bounds = array<i64: 16, 16>}, {pipeline_mode = #tpu.pipeline_mode<synchronous>, transform_indices = @transform_6, window_bounds = array<i64: 2, 16>}, {pipeline_mode = #tpu.pipeline_mode<synchronous>, transform_indices = @transform_7, window_bounds = array<i64: 1, 16>}, {pipeline_mode = #tpu.pipeline_mode<synchronous>, transform_indices = @transform_8, window_bounds = array<i64: 16, 32>}, {pipeline_mode = #tpu.pipeline_mode<synchronous>, transform_indices = @transform_9, window_bounds = array<i64: 1, 32>}, {pipeline_mode = #tpu.pipeline_mode<synchronous>, transform_indices = @transform_10, window_bounds = array<i64: 32, 128>}, {pipeline_mode = #tpu.pipeline_mode<synchronous>, transform_indices = @transform_11, window_bounds = array<i64: 1, 128>}, {pipeline_mode = #tpu.pipeline_mode<synchronous>, transform_indices = @transform_12, window_bounds = array<i64: 16, 128>}]} {
    %c0 = arith.constant 0 : index
    %c0_0 = arith.constant 0 : index
    %0 = vector.load %arg2[%c0, %c0_0] : memref<16x8xf32, #tpu.memory_space<vmem>>, vector<16x8xf32>
    %1 = arith.truncf %0 : vector<16x8xf32> to vector<16x8xbf16>
    %c0_1 = arith.constant 0 : index
    %c0_2 = arith.constant 0 : index
    %2 = vector.load %arg3[%c0_1, %c0_2] : memref<8x16xf32, #tpu.memory_space<vmem>>, vector<8x16xf32>
    %3 = arith.truncf %2 : vector<8x16xf32> to vector<8x16xbf16>
    %cst = arith.constant dense<0.000000e+00> : vector<16x16xf32>
    %4 = tpu.matmul %1, %3, %cst {dimension_numbers = #tpu.dot_dimension_numbers<[1], [0], [0], [1], [0, 0, 1, 1], [], []>} : vector<16x8xbf16>, vector<8x16xbf16>, vector<16x16xf32> -> vector<16x16xf32>
    %c0_3 = arith.constant 0 : index
    %c0_4 = arith.constant 0 : index
    %5 = vector.load %arg4[%c0_3, %c0_4] : memref<2x16xf32, #tpu.memory_space<vmem>>, vector<1x16xf32>
    %c1 = arith.constant 1 : index
    %c0_5 = arith.constant 0 : index
    %6 = vector.load %arg4[%c1, %c0_5] : memref<2x16xf32, #tpu.memory_space<vmem>>, vector<1x16xf32>
    %7 = vector.broadcast %6 : vector<1x16xf32> to vector<16x16xf32>
    %8 = arith.mulf %4, %7 : vector<16x16xf32>
    %cst_6 = arith.constant dense<0.000000e+00> : vector<16xf32>
    %9 = vector.multi_reduction <add>, %8, %cst_6 [1] : vector<16x16xf32> to vector<16xf32>
    %10 = vector.shape_cast %9 : vector<16xf32> to vector<16x1xf32>
    %cst_7 = arith.constant dense<0.000000e+00> : vector<1x16xf32>
    %11 = tpu.matmul %5, %4, %cst_7 {dimension_numbers = #tpu.dot_dimension_numbers<[1], [1], [0], [0], [0, 0, 1, 0], [], []>} : vector<1x16xf32>, vector<16x16xf32>, vector<1x16xf32> -> vector<1x16xf32>
    %12 = arith.truncf %4 : vector<16x16xf32> to vector<16x16xbf16>
    %c0_8 = arith.constant 0 : index
    %c0_9 = arith.constant 0 : index
    %13 = vector.load %arg15[%c0_8, %c0_9] : memref<16x1xf32, #tpu.memory_space<vmem>>, vector<16x1xf32>
    tpu.vector_store %arg15[%c0_8, %c0_9], %10 {strides = array<i32>} : memref<16x1xf32, #tpu.memory_space<vmem>>, vector<16x1xf32>,
    %c0_10 = arith.constant 0 : index
    %c0_11 = arith.constant 0 : index
    %14 = vector.load %arg5[%c0_10, %c0_11] : memref<1x16xf32, #tpu.memory_space<vmem>>, vector<1x16xf32>
    %c0_12 = arith.constant 0 : index
    %c0_13 = arith.constant 0 : index
    %15 = vector.load %arg1[%c0_12, %c0_13] : memref<16x16xi8, #tpu.memory_space<vmem>>, vector<16x16xi8>
    %c0_i8 = arith.constant 0 : i8
    %16 = vector.broadcast %c0_i8 : i8 to vector<16x16xi8>
    %17 = arith.cmpi ne, %15, %16 : vector<16x16xi8>
    %c0_14 = arith.constant 0 : index
    %c0_15 = arith.constant 0 : index
    %18 = vector.load %arg15[%c0_14, %c0_15] : memref<16x1xf32, #tpu.memory_space<vmem>>, vector<16x1xf32>
    %19 = vector.broadcast %18 : vector<16x1xf32> to vector<16x16xf32>
    %20 = vector.broadcast %11 : vector<1x16xf32> to vector<16x16xf32>
    %21 = arith.addf %19, %20 : vector<16x16xf32>
    %cst_16 = arith.constant 0.000000e+00 : f32
    %22 = vector.broadcast %cst_16 : f32 to vector<16x16xf32>
    %23 = arith.cmpf ogt, %21, %22 : vector<16x16xf32>
    %cst_17 = arith.constant 2.000000e-01 : f32
    %24 = vector.broadcast %cst_17 : f32 to vector<16x16xf32>
    %25 = arith.mulf %24, %21 : vector<16x16xf32>
    %26 = arith.select %23, %21, %25 : vector<16x16xi1>, vector<16x16xf32>
    %cst_18 = arith.constant -1.000000e+30 : f32
    %27 = vector.broadcast %cst_18 : f32 to vector<16x16xf32>
    %28 = arith.select %17, %26, %27 : vector<16x16xi1>, vector<16x16xf32>
    %cst_19 = arith.constant dense<0xFF800000> : vector<16xf32>
    %29 = vector.multi_reduction <maximumf>, %28, %cst_19 [1] : vector<16x16xf32> to vector<16xf32>
    %30 = vector.shape_cast %29 : vector<16xf32> to vector<16x1xf32>
    %31 = vector.broadcast %30 : vector<16x1xf32> to vector<16x16xf32>
    %32 = arith.subf %28, %31 : vector<16x16xf32>
    %33 = math.exp %32 : vector<16x16xf32>
    %cst_20 = arith.constant 0.000000e+00 : f32
    %34 = vector.broadcast %cst_20 : f32 to vector<16x16xf32>
    %35 = arith.select %17, %33, %34 : vector<16x16xi1>, vector<16x16xf32>
    %cst_21 = arith.constant dense<0.000000e+00> : vector<16xf32>
    %36 = vector.multi_reduction <add>, %35, %cst_21 [1] : vector<16x16xf32> to vector<16xf32>
    %37 = vector.shape_cast %36 : vector<16xf32> to vector<16x1xf32>
    %cst_22 = arith.constant 9.99999968E-21 : f32
    %38 = vector.broadcast %cst_22 : f32 to vector<16x1xf32>
    %39 = arith.maximumf %37, %38 : vector<16x1xf32>
    %40 = tpu.reciprocal %39 {approx = true} : vector<16x1xf32> -> vector<16x1xf32>
    %41 = vector.broadcast %40 : vector<16x1xf32> to vector<16x16xf32>
    %42 = arith.mulf %35, %41 : vector<16x16xf32>
    %43 = arith.truncf %42 : vector<16x16xf32> to vector<16x16xbf16>
    %cst_23 = arith.constant dense<0.000000e+00> : vector<16x16xf32>
    %44 = tpu.matmul %43, %12, %cst_23 {dimension_numbers = #tpu.dot_dimension_numbers<[1], [0], [0], [1], [0, 0, 1, 1], [], []>} : vector<16x16xbf16>, vector<16x16xbf16>, vector<16x16xf32> -> vector<16x16xf32>
    %45 = vector.broadcast %14 : vector<1x16xf32> to vector<16x16xf32>
    %46 = arith.addf %44, %45 : vector<16x16xf32>
    %cst_24 = arith.constant 0.000000e+00 : f32
    %47 = vector.broadcast %cst_24 : f32 to vector<16x16xf32>
    %48 = arith.maximumf %46, %47 : vector<16x16xf32>
    %c0_25 = arith.constant 0 : index
    %c0_26 = arith.constant 0 : index
    %49 = vector.load %arg14[%c0_25, %c0_26] : memref<16x16xf32, #tpu.memory_space<vmem>>, vector<16x16xf32>
    tpu.vector_store %arg14[%c0_25, %c0_26], %48 {strides = array<i32>} : memref<16x16xf32, #tpu.memory_space<vmem>>, vector<16x16xf32>,
    %c0_27 = arith.constant 0 : index
    %c0_28 = arith.constant 0 : index
    %50 = vector.load %arg14[%c0_27, %c0_28] : memref<16x16xf32, #tpu.memory_space<vmem>>, vector<16x16xf32>
    %51 = arith.truncf %50 : vector<16x16xf32> to vector<16x16xbf16>
    %c0_29 = arith.constant 0 : index
    %c0_30 = arith.constant 0 : index
    %52 = vector.load %arg6[%c0_29, %c0_30] : memref<16x16xf32, #tpu.memory_space<vmem>>, vector<16x16xf32>
    %53 = arith.truncf %52 : vector<16x16xf32> to vector<16x16xbf16>
    %cst_31 = arith.constant dense<0.000000e+00> : vector<16x16xf32>
    %54 = tpu.matmul %51, %53, %cst_31 {dimension_numbers = #tpu.dot_dimension_numbers<[1], [0], [0], [1], [0, 0, 1, 1], [], []>} : vector<16x16xbf16>, vector<16x16xbf16>, vector<16x16xf32> -> vector<16x16xf32>
    %c0_32 = arith.constant 0 : index
    %c0_33 = arith.constant 0 : index
    %55 = vector.load %arg7[%c0_32, %c0_33] : memref<2x16xf32, #tpu.memory_space<vmem>>, vector<1x16xf32>
    %c1_34 = arith.constant 1 : index
    %c0_35 = arith.constant 0 : index
    %56 = vector.load %arg7[%c1_34, %c0_35] : memref<2x16xf32, #tpu.memory_space<vmem>>, vector<1x16xf32>
    %57 = vector.broadcast %56 : vector<1x16xf32> to vector<16x16xf32>
    %58 = arith.mulf %54, %57 : vector<16x16xf32>
    %cst_36 = arith.constant dense<0.000000e+00> : vector<16xf32>
    %59 = vector.multi_reduction <add>, %58, %cst_36 [1] : vector<16x16xf32> to vector<16xf32>
    %60 = vector.shape_cast %59 : vector<16xf32> to vector<16x1xf32>
    %cst_37 = arith.constant dense<0.000000e+00> : vector<1x16xf32>
    %61 = tpu.matmul %55, %54, %cst_37 {dimension_numbers = #tpu.dot_dimension_numbers<[1], [1], [0], [0], [0, 0, 1, 0], [], []>} : vector<1x16xf32>, vector<16x16xf32>, vector<1x16xf32> -> vector<1x16xf32>
    %62 = arith.truncf %54 : vector<16x16xf32> to vector<16x16xbf16>
    %c0_38 = arith.constant 0 : index
    %c0_39 = arith.constant 0 : index
    %63 = vector.load %arg15[%c0_38, %c0_39] : memref<16x1xf32, #tpu.memory_space<vmem>>, vector<16x1xf32>
    tpu.vector_store %arg15[%c0_38, %c0_39], %60 {strides = array<i32>} : memref<16x1xf32, #tpu.memory_space<vmem>>, vector<16x1xf32>,
    %c0_40 = arith.constant 0 : index
    %c0_41 = arith.constant 0 : index
    %64 = vector.load %arg8[%c0_40, %c0_41] : memref<1x16xf32, #tpu.memory_space<vmem>>, vector<1x16xf32>
    %c0_42 = arith.constant 0 : index
    %c0_43 = arith.constant 0 : index
    %65 = vector.load %arg1[%c0_42, %c0_43] : memref<16x16xi8, #tpu.memory_space<vmem>>, vector<16x16xi8>
    %c0_i8_44 = arith.constant 0 : i8
    %66 = vector.broadcast %c0_i8_44 : i8 to vector<16x16xi8>
    %67 = arith.cmpi ne, %65, %66 : vector<16x16xi8>
    %c0_45 = arith.constant 0 : index
    %c0_46 = arith.constant 0 : index
    %68 = vector.load %arg15[%c0_45, %c0_46] : memref<16x1xf32, #tpu.memory_space<vmem>>, vector<16x1xf32>
    %69 = vector.broadcast %68 : vector<16x1xf32> to vector<16x16xf32>
    %70 = vector.broadcast %61 : vector<1x16xf32> to vector<16x16xf32>
    %71 = arith.addf %69, %70 : vector<16x16xf32>
    %cst_47 = arith.constant 0.000000e+00 : f32
    %72 = vector.broadcast %cst_47 : f32 to vector<16x16xf32>
    %73 = arith.cmpf ogt, %71, %72 : vector<16x16xf32>
    %cst_48 = arith.constant 2.000000e-01 : f32
    %74 = vector.broadcast %cst_48 : f32 to vector<16x16xf32>
    %75 = arith.mulf %74, %71 : vector<16x16xf32>
    %76 = arith.select %73, %71, %75 : vector<16x16xi1>, vector<16x16xf32>
    %cst_49 = arith.constant -1.000000e+30 : f32
    %77 = vector.broadcast %cst_49 : f32 to vector<16x16xf32>
    %78 = arith.select %67, %76, %77 : vector<16x16xi1>, vector<16x16xf32>
    %cst_50 = arith.constant dense<0xFF800000> : vector<16xf32>
    %79 = vector.multi_reduction <maximumf>, %78, %cst_50 [1] : vector<16x16xf32> to vector<16xf32>
    %80 = vector.shape_cast %79 : vector<16xf32> to vector<16x1xf32>
    %81 = vector.broadcast %80 : vector<16x1xf32> to vector<16x16xf32>
    %82 = arith.subf %78, %81 : vector<16x16xf32>
    %83 = math.exp %82 : vector<16x16xf32>
    %cst_51 = arith.constant 0.000000e+00 : f32
    %84 = vector.broadcast %cst_51 : f32 to vector<16x16xf32>
    %85 = arith.select %67, %83, %84 : vector<16x16xi1>, vector<16x16xf32>
    %cst_52 = arith.constant dense<0.000000e+00> : vector<16xf32>
    %86 = vector.multi_reduction <add>, %85, %cst_52 [1] : vector<16x16xf32> to vector<16xf32>
    %87 = vector.shape_cast %86 : vector<16xf32> to vector<16x1xf32>
    %cst_53 = arith.constant 9.99999968E-21 : f32
    %88 = vector.broadcast %cst_53 : f32 to vector<16x1xf32>
    %89 = arith.maximumf %87, %88 : vector<16x1xf32>
    %90 = tpu.reciprocal %89 {approx = true} : vector<16x1xf32> -> vector<16x1xf32>
    %91 = vector.broadcast %90 : vector<16x1xf32> to vector<16x16xf32>
    %92 = arith.mulf %85, %91 : vector<16x16xf32>
    %93 = arith.truncf %92 : vector<16x16xf32> to vector<16x16xbf16>
    %cst_54 = arith.constant dense<0.000000e+00> : vector<16x16xf32>
    %94 = tpu.matmul %93, %62, %cst_54 {dimension_numbers = #tpu.dot_dimension_numbers<[1], [0], [0], [1], [0, 0, 1, 1], [], []>} : vector<16x16xbf16>, vector<16x16xbf16>, vector<16x16xf32> -> vector<16x16xf32>
    %95 = vector.broadcast %64 : vector<1x16xf32> to vector<16x16xf32>
    %96 = arith.addf %94, %95 : vector<16x16xf32>
    %c0_55 = arith.constant 0 : index
    %c0_56 = arith.constant 0 : index
    %97 = vector.load %arg14[%c0_55, %c0_56] : memref<16x16xf32, #tpu.memory_space<vmem>>, vector<16x16xf32>
    tpu.vector_store %arg14[%c0_55, %c0_56], %96 {strides = array<i32>} : memref<16x16xf32, #tpu.memory_space<vmem>>, vector<16x16xf32>,
    %c0_57 = arith.constant 0 : index
    %c0_58 = arith.constant 0 : index
    %98 = vector.load %arg14[%c0_57, %c0_58] : memref<16x16xf32, #tpu.memory_space<vmem>>, vector<16x16xf32>
    %99 = arith.truncf %98 : vector<16x16xf32> to vector<16x16xbf16>
    %c0_59 = arith.constant 0 : index
    %c0_60 = arith.constant 0 : index
    %100 = vector.load %arg9[%c0_59, %c0_60] : memref<16x32xf32, #tpu.memory_space<vmem>>, vector<16x32xf32>
    %101 = arith.truncf %100 : vector<16x32xf32> to vector<16x32xbf16>
    %cst_61 = arith.constant dense<0.000000e+00> : vector<16x32xf32>
    %102 = tpu.matmul %99, %101, %cst_61 {dimension_numbers = #tpu.dot_dimension_numbers<[1], [0], [0], [1], [0, 0, 1, 1], [], []>} : vector<16x16xbf16>, vector<16x32xbf16>, vector<16x32xf32> -> vector<16x32xf32>
    %c0_62 = arith.constant 0 : index
    %c0_63 = arith.constant 0 : index
    %103 = vector.load %arg10[%c0_62, %c0_63] : memref<1x32xf32, #tpu.memory_space<vmem>>, vector<1x32xf32>
    %104 = vector.broadcast %103 : vector<1x32xf32> to vector<16x32xf32>
    %105 = arith.addf %102, %104 : vector<16x32xf32>
    %cst_64 = arith.constant 0.000000e+00 : f32
    %106 = vector.broadcast %cst_64 : f32 to vector<16x32xf32>
    %107 = arith.maximumf %105, %106 : vector<16x32xf32>
    %108 = arith.truncf %107 : vector<16x32xf32> to vector<16x32xbf16>
    %c0_65 = arith.constant 0 : index
    %c0_66 = arith.constant 0 : index
    %109 = vector.load %arg11[%c0_65, %c0_66] : memref<32x128xf32, #tpu.memory_space<vmem>>, vector<32x128xf32>
    %110 = arith.truncf %109 : vector<32x128xf32> to vector<32x128xbf16>
    %cst_67 = arith.constant dense<0.000000e+00> : vector<16x128xf32>
    %111 = tpu.matmul %108, %110, %cst_67 {dimension_numbers = #tpu.dot_dimension_numbers<[1], [0], [0], [1], [0, 0, 1, 1], [], []>} : vector<16x32xbf16>, vector<32x128xbf16>, vector<16x128xf32> -> vector<16x128xf32>
    %c0_68 = arith.constant 0 : index
    %c0_69 = arith.constant 0 : index
    %112 = vector.load %arg12[%c0_68, %c0_69] : memref<1x128xf32, #tpu.memory_space<vmem>>, vector<1x128xf32>
    %113 = vector.broadcast %112 : vector<1x128xf32> to vector<16x128xf32>
    %114 = arith.addf %111, %113 : vector<16x128xf32>
    %c0_70 = arith.constant 0 : index
    %c0_71 = arith.constant 0 : index
    %115 = vector.load %arg13[%c0_70, %c0_71] : memref<16x128xf32, #tpu.memory_space<vmem>>, vector<16x128xf32>
    tpu.vector_store %arg13[%c0_70, %c0_71], %114 {strides = array<i32>} : memref<16x128xf32, #tpu.memory_space<vmem>>, vector<16x128xf32>,
    return
  }
  func.func @transform_0(%arg0: i32) -> (i32, i32) {
    %c0_i32 = arith.constant 0 : i32
    %c0_i32_0 = arith.constant 0 : i32
    %c0_i32_1 = arith.constant 0 : i32
    return %c0_i32, %c0_i32_0 : i32, i32
  }
  func.func @transform_1(%arg0: i32) -> (i32, i32) {
    %c0_i32 = arith.constant 0 : i32
    %c0_i32_0 = arith.constant 0 : i32
    %c0_i32_1 = arith.constant 0 : i32
    return %c0_i32, %c0_i32_0 : i32, i32
  }
  func.func @transform_2(%arg0: i32) -> (i32, i32) {
    %c0_i32 = arith.constant 0 : i32
    %c0_i32_0 = arith.constant 0 : i32
    %c0_i32_1 = arith.constant 0 : i32
    return %c0_i32, %c0_i32_0 : i32, i32
  }
  func.func @transform_3(%arg0: i32) -> (i32, i32) {
    %c0_i32 = arith.constant 0 : i32
    %c0_i32_0 = arith.constant 0 : i32
    %c0_i32_1 = arith.constant 0 : i32
    return %c0_i32, %c0_i32_0 : i32, i32
  }
  func.func @transform_4(%arg0: i32) -> (i32, i32) {
    %c0_i32 = arith.constant 0 : i32
    %c0_i32_0 = arith.constant 0 : i32
    %c0_i32_1 = arith.constant 0 : i32
    return %c0_i32, %c0_i32_0 : i32, i32
  }
  func.func @transform_5(%arg0: i32) -> (i32, i32) {
    %c0_i32 = arith.constant 0 : i32
    %c0_i32_0 = arith.constant 0 : i32
    %c0_i32_1 = arith.constant 0 : i32
    return %c0_i32, %c0_i32_0 : i32, i32
  }
  func.func @transform_6(%arg0: i32) -> (i32, i32) {
    %c0_i32 = arith.constant 0 : i32
    %c0_i32_0 = arith.constant 0 : i32
    %c0_i32_1 = arith.constant 0 : i32
    return %c0_i32, %c0_i32_0 : i32, i32
  }
  func.func @transform_7(%arg0: i32) -> (i32, i32) {
    %c0_i32 = arith.constant 0 : i32
    %c0_i32_0 = arith.constant 0 : i32
    %c0_i32_1 = arith.constant 0 : i32
    return %c0_i32, %c0_i32_0 : i32, i32
  }
  func.func @transform_8(%arg0: i32) -> (i32, i32) {
    %c0_i32 = arith.constant 0 : i32
    %c0_i32_0 = arith.constant 0 : i32
    %c0_i32_1 = arith.constant 0 : i32
    return %c0_i32, %c0_i32_0 : i32, i32
  }
  func.func @transform_9(%arg0: i32) -> (i32, i32) {
    %c0_i32 = arith.constant 0 : i32
    %c0_i32_0 = arith.constant 0 : i32
    %c0_i32_1 = arith.constant 0 : i32
    return %c0_i32, %c0_i32_0 : i32, i32
  }
  func.func @transform_10(%arg0: i32) -> (i32, i32) {
    %c0_i32 = arith.constant 0 : i32
    %c0_i32_0 = arith.constant 0 : i32
    %c0_i32_1 = arith.constant 0 : i32
    return %c0_i32, %c0_i32_0 : i32, i32
  }
  func.func @transform_11(%arg0: i32) -> (i32, i32) {
    %c0_i32 = arith.constant 0 : i32
    %c0_i32_0 = arith.constant 0 : i32
    %c0_i32_1 = arith.constant 0 : i32
    return %c0_i32, %c0_i32_0 : i32, i32
  }
  func.func @transform_12(%arg0: i32) -> (i32, i32) {
    %c0_i32 = arith.constant 0 : i32
    %c0_i32_0 = arith.constant 0 : i32
    %c0_i32_1 = arith.constant 0 : i32
    return %c0_i32, %c0_i32_0 : i32, i32
  }
}

</mosaic_0001>

<bundles_post_ra>
// kernel: tpu_custom_call.1
= control target key start
LH: loop header
LB: loop body
LE: loop exit
PB: predicated region body
PF: predicated region fallthrough
CT: control target
= control target key end

     0   :  { %17 = vsyncpa [#allocation5], 0  ;;  %s1036_s0 = inlined_call_operand.hbm [shape: s8[16,16], index: 0, kind: input, shape index: {}]   ;;  %s1037_s1 = inlined_call_operand.vmem [shape: f32[16,8], index: 1, kind: input, shape index: {}]   ;;  %s1038_s2 = inlined_call_operand.hbm [shape: f32[8,16], index: 2, kind: input, shape index: {}]   ;;  %s1039_s3 = inlined_call_operand.hbm [shape: f32[2,16], index: 3, kind: input, shape index: {}]   ;;  %s1040_s4 = inlined_call_operand.vmem [shape: f32[1,16], index: 4, kind: input, shape index: {}]   ;;  %s1041_s5 = inlined_call_operand.hbm [shape: f32[16,16], index: 5, kind: input, shape index: {}]   ;;  %s1042_s6 = inlined_call_operand.hbm [shape: f32[2,16], index: 6, kind: input, shape index: {}]   ;;  %s1043_s7 = inlined_call_operand.hbm [shape: f32[1,16], index: 7, kind: input, shape index: {}]   ;;  %s1044_s8 = inlined_call_operand.hbm [shape: f32[16,32], index: 8, kind: input, shape index: {}]   ;;  %s1045_s9 = inlined_call_operand.hbm [shape: f32[1,32], index: 9, kind: input, shape index: {}]   ;;  %s1046_s10 = inlined_call_operand.vmem [shape: f32[32,128], index: 10, kind: input, shape index: {}]   ;;  %s1047_s11 = inlined_call_operand.vmem [shape: f32[1,128], index: 11, kind: input, shape index: {}]   ;;  %s1048_s12 = inlined_call_operand.hbm [shape: f32[16,128], index: 12, kind: output, shape index: {}]  }
   0x1   :  { %18 = vsyncpa [#allocation8], 0 }
   0x2   :  { %19 = vsyncpa [#allocation11], 0 }
   0x3   :  { %20 = vsyncpa [#allocation14], 0 }
   0x4   :  { %21 = vsyncpa [#allocation17], 0  ;;  %s43_s23 = sshll.u32 %s1038_s2, 4  ;;  %s44_s23 = int_to_ptr.hbm [resolvable:$true] %s43_s23 }
   0x5   :  { %22 = vsyncpa [#allocation6], 0  ;;  %s828_s24 = smov [#allocation7]   ;;  %s66_s28 = sshll.u32 %s1041_s5, 4  ;;  %s67_s28 = int_to_ptr.hbm [resolvable:$true] %s66_s28 }
   0x6   :  { %s45_s25 = sshll.u32 %s828_s24, 4  ;;  %s829_s29 = smov [#allocation10]   ;;  %s46_s25 = int_to_ptr.vmem [resolvable:$true] %s45_s25 }
   0x7   :  { %48 = dma.hbm_to_vmem [thread:$0]  %s44_s23, 128, %s46_s25, [#allocation8]  }
   0x8   :  { %s68_s30 = sshll.u32 %s829_s29, 4  ;;  %s830_s13 = smov 128   ;;  %s69_s30 = int_to_ptr.vmem [resolvable:$true] %s68_s30 }
   0x9   :  { %s831_s14 = smov 8   ;;  %s91_s16 = sshll.u32 %s1043_s7, 4  ;;  %s92_s16 = int_to_ptr.hbm [resolvable:$true] %s91_s16 }
   0xa   :  { %74 = dma.hbm_to_vmem [thread:$0]  %s67_s28, 256, %s69_s30, [#allocation11], %s830_s13, %s830_s13, %s831_s14  }
   0xb   :  { %s832_s17 = smov [#allocation13]   ;;  %s27_s20 = sshll.u32 %s1036_s0, 4  ;;  %s28_s20 = int_to_ptr.hbm [resolvable:$true] %s27_s20 }
   0xc   :  { %s93_s18 = sshll.u32 %s832_s17, 4  ;;  %s833_s21 = smov [#allocation4]   ;;  %s94_s18 = int_to_ptr.vmem [resolvable:$true] %s93_s18 }
   0xd   :  { %96 = dma.hbm_to_vmem [thread:$0]  %s92_s16, 16, %s94_s18, [#allocation14]  }
   0xe   :  { %s29_s22 = sshll.u32 %s833_s21, 4  ;;  %s834_s23 = smov 32   ;;  %s30_s22 = int_to_ptr.vmem [resolvable:$true] %s29_s22 }
   0xf   :  { %s835_s24 = smov 2   ;;  %s54_s7 = sshll.u32 %s1039_s3, 4  ;;  %s55_s7 = int_to_ptr.hbm [resolvable:$true] %s54_s7 }
  0x10   :  { %35 = dma.hbm_to_vmem [thread:$0]  %s28_s20, 64, %s30_s22, [#allocation5], %s834_s23, %s834_s23, %s835_s24  }
  0x11   :  { %s836_s27 = smov [#allocation9]   ;;  %s80_s0 = sshll.u32 %s1042_s6, 4  ;;  %s81_s0 = int_to_ptr.hbm [resolvable:$true] %s80_s0 }
  0x12   :  { %s56_s28 = sshll.u32 %s836_s27, 4  ;;  %s837_s2 = smov [#allocation12]   ;;  %s57_s28 = int_to_ptr.vmem [resolvable:$true] %s56_s28 }
  0x13   :  { %59 = dma.hbm_to_vmem [thread:$0]  %s55_s7, 32, %s57_s28, [#allocation8]  }
  0x14   :  { %s82_s15 = sshll.u32 %s837_s2, 4  ;;  %s101_s18 = sshll.u32 %s1044_s8, 4  ;;  %s83_s15 = int_to_ptr.vmem [resolvable:$true] %s82_s15  ;;  %s102_s18 = int_to_ptr.hbm [resolvable:$true] %s101_s18 }
  0x15   :  { %85 = dma.hbm_to_vmem [thread:$0]  %s81_s0, 32, %s83_s15, [#allocation11]  }
  0x16   :  { %s115_s19 = sshll.u32 %s1045_s9, 4  ;;  %s838_s20 = smov [#allocation15]   ;;  %s116_s19 = int_to_ptr.hbm [resolvable:$true] %s115_s19 }
  0x17   :  { %s103_s21 = sshll.u32 %s838_s20, 4  ;;  %s839_s6 = smov [#allocation16]   ;;  %s104_s21 = int_to_ptr.vmem [resolvable:$true] %s103_s21 }
  0x18   :  { %109 = dma.hbm_to_vmem [thread:$0]  %s102_s18, 256, %s104_s21, [#allocation14], %s830_s13, %s830_s13, %s831_s14  }
  0x19   :  { %s117_s22 = sshll.u32 %s839_s6, 4  ;;  %s118_s22 = int_to_ptr.vmem [resolvable:$true] %s117_s22 }
  0x1a   :  { %120 = dma.hbm_to_vmem [thread:$0]  %s116_s19, 16, %s118_s22, [#allocation17]  }
  0x1b   :  { %816 = dma.done.wait [#allocation5], 64  }
  0x1c   :  { %817 = vsyncadd [#allocation5], 4294967232 }
  0x1d   :  { %818 = dma.done.wait [#allocation8], 160  }
  0x1e   :  { %819 = vsyncadd [#allocation8], 4294967136 }
  0x1f   :  { %820 = dma.done.wait [#allocation11], 288  }
  0x20   :  { %821 = vsyncadd [#allocation11], 4294967008 }
  0x21   :  { %822 = dma.done.wait [#allocation14], 272  }
  0x22   :  { %823 = vsyncadd [#allocation14], 4294967024 }
  0x23   :  { %824 = dma.done.wait [#allocation17], 16  }
  0x24   :  { %825 = vsyncadd [#allocation17], 4294967280  ;;  %v163_v0 = vld [vmem:[#allocation7] sm:$0xff]  ;;  %vm169_vm0 = vcmask 1043456   ;;  %vm165_vm1 = vcmask 64512   ;;  %vm192_vm2 = vcmask 130048  }
  0x25   :  { %v160_v1 = vld [vmem:[%s1037_s1] sm:$0xff]  ;;  %v161_v2 = vld [vmem:[%s1037_s1 + $0x8] sm:$0xff]  ;;  %v164_v3 = vpack.c.bf16 %v163_v0, %v163_v0  ;;  %v840_v15 = vmov 0   ;;  %vm229_vm3 = vcmask 7168   ;;  %v321_v0 = vld [vmem:[#allocation10 + $0x8] sm:$0xff]  ;;  %s532_s3 = sshll.u32 %s1048_s12, 4  ;;  %s533_s3 = int_to_ptr.hbm [resolvable:$true] %s532_s3 }
  0x26   :  { %v162_v5 = vpack.c.bf16 %v161_v2, %v160_v1  ;;  %v578_v6 = vld [vmem:[#allocation9 + $0x1] ss:$0 sm:$0xff]  ;;  %v187_v14 = vld [vmem:[#allocation9] sm:$0x1]  ;;  %575 = vset.pattern.permute.xlu1 %v840_v15  ;;  %576 = vset.pattern.permute.xlu2 %v840_v15  ;;  %v233_v20 = vld [vmem:[#allocation4] sm:$0x3] }
  0x27   :  { %v171_v4 = vsel %vm169_vm0, %v164_v3, 0  ;;  %577 = vset.pattern.permute.xlu0 %v840_v15  ;;  %vm235_vm4 = vnez %v233_v20  ;;  %v234_v24 = vld [vmem:[#allocation4 + $0x2] sm:$0x3]  ;;  %v320_v63 = vld [vmem:[#allocation10] sm:$0xff]  ;;  %v579_v2 = vld [vmem:[%s1040_s4] ss:$0 sm:$0xff] }
  0x28   :  { %180 = vmatpush.bf16.msra.mxu0 %v171_v4  ;;  %v258_v22 = vsel %vm235_vm4, 16843009, %v840_v15  ;;  %vm236_vm5 = vnez %v234_v24  ;;  %v322_v1 = vpack.c.bf16 %v321_v0, %v320_v63  ;;  %v385_v38 = vld [vmem:[#allocation4 + $0x2] sm:$0x3]  ;;  %vm506_vm0 = vcmask 261120  }
  0x29   :  { %v260_v25 = vunpack.c.0.s8 %v258_v22  ;;  %v259_v30 = vsel %vm236_vm5, 16843009, %v840_v15  ;;  %vm387_vm13 = vnez %v385_v38 }
  0x2a   :  { %v261_v34 = vunpack.c.0.s8 %v259_v30  ;;  %333 = vmatpush.bf16.msra.mxu3 %v322_v1 }
  0x2b   :  { %549 = vmatmul.msk.bf16.vlgmr.msra.gmra.mxu0 %vm165_vm1, %v162_v5  ;;  %vm954_vm7 = vcmp.ne.s32.totalorder %v260_v25, 0 }
  0x2c   :  { %vm962_vm9 = vcmp.ne.s32.totalorder %v261_v34, 0 }
  0xa8   :  { %v182_v7 = vpop.f32.mrf.mxu0 }
  0xa9   :  { %v190_v8 = vmul.f32 %v578_v6, %v182_v7 }
  0xab   :  { %v193_v9 = vsel %vm192_vm2, %v190_v8, 0.0 }
  0xac   :  { %194 = vadd.xlane.f32.xlu0 %v193_v9 }
  0xb0   :  { %v184_v10 = vpop.f32.mrf.mxu0 }
  0xb1   :  { %550 = vmatpush.xpose.msk.msra.mxu1 %vm192_vm2, %v184_v10  ;;  %v228_v11 = vpack.c.bf16 %v184_v10, %v182_v7  ;;  %v191_v12 = vmul.f32 %v578_v6, %v184_v10 }
  0xb3   :  { %306 = vmatpush.bf16.msra.mxu2 %v228_v11  ;;  %v196_v13 = vsel %vm192_vm2, %v191_v12, 0.0  ;;  %v580_v12 = vld [vmem:[#allocation12 + $0x1] ss:$0 sm:$0xff] }
  0xb4   :  { %197 = vadd.xlane.f32.xlu0 %v196_v13 }
  0xb5   :  { %551 = vmatpush.xpose.msk.msra.mxu1 %vm192_vm2, %v182_v7 }
  0xb8   :  { %552 = vmatmul.msk.f32.vlgmr.msra.gmra.mxu1 %vm192_vm2, %v187_v14 }
 0x11f   :  { %v195_v16 = vpop.xlane.xlu0 %194 }
 0x120   :  { %230 = vst.msk [vmem:[#allocation3] sm:$0xff] %vm229_vm3, %v195_v16 }
 0x127   :  { %v198_v17 = vpop.xlane.xlu0 %197  ;;  %v237_v18 = vld [vmem:[#allocation3] sm:$0xff] }
 0x128   :  { %231 = vst.msk [vmem:[#allocation3 + $0x8] sm:$0xff] %vm229_vm3, %v198_v17  ;;  %241 = vperm.xlu1 %575, %v237_v18  }
 0x12f   :  { %v238_v19 = vld [vmem:[#allocation3 + $0x8] sm:$0xff] }
 0x130   :  { %246 = vperm.xlu1 %575, %v238_v19  }
 0x135   :  { %v225_v21 = vpop.f32.mrf.mxu1 }
 0x136   :  { %v249_v23 = vperm.slane %v225_v21, 0  ;;  %v340_v21 = vld [vmem:[#allocation12] sm:$0x1] }
 0x19a   :  { %v242_v26 = vpop.permute.xlu1 %241 }
 0x19b   :  { %v250_v27 = vadd.f32 %v249_v23, %v242_v26  ;;  %v384_v26 = vld [vmem:[#allocation4] sm:$0x3] }
 0x19c   :  { %vm386_vm10 = vnez %v384_v26 }
 0x19d   :  { %v254_v28 = vmul.f32 0.2, %v250_v27  ;;  %vm252_vm6 = vcmp.gt.f32.partialorder %v250_v27, 0.0 }
 0x19f   :  { %v256_v31 = vsel %vm252_vm6, %v250_v27, %v254_v28  ;;  %v409_v28 = vsel %vm386_vm10, 16843009, %v840_v15 }
 0x1a0   :  { %v264_v32 = vsel %vm954_vm7, %v256_v31, -1e+30  ;;  %v411_v30 = vunpack.c.0.s8 %v409_v28 }
 0x1a1   :  { %v266_v33 = vsel %vm192_vm2, %v264_v32, -inf }
 0x1a2   :  { %267 = vmax.xlane.f32.xlu2 %v266_v33  ;;  %v247_v35 = vpop.permute.xlu1 %246  ;;  %vm990_vm12 = vcmp.ne.s32.totalorder %v411_v30, 0  ;;  %v583_v30 = vld [vmem:[%s1047_s11] ss:$0 sm:$0xff] }
 0x1a3   :  { %v251_v36 = vadd.f32 %v249_v23, %v247_v35 }
 0x1a5   :  { %v255_v37 = vmul.f32 0.2, %v251_v36  ;;  %vm253_vm8 = vcmp.gt.f32.partialorder %v251_v36, 0.0 }
 0x1a7   :  { %v257_v39 = vsel %vm253_vm8, %v251_v36, %v255_v37 }
 0x1a8   :  { %v265_v40 = vsel %vm962_vm9, %v257_v39, -1e+30  ;;  %v410_v39 = vsel %vm387_vm13, 16843009, %v840_v15 }
 0x1a9   :  { %v269_v41 = vsel %vm192_vm2, %v265_v40, -inf }
 0x1aa   :  { %270 = vmax.xlane.f32.xlu2 %v269_v41 }
 0x215   :  { %v268_v42 = vpop.xlane.xlu2 %267 }
 0x216   :  { %v272_v43 = vsub.f32 %v264_v32, %v268_v42 }
 0x218   :  { %v274_v44 = vmul.f32 1.442695, %v272_v43 }
 0x21a   :  { %584 = vpow2.f32 %v274_v44 }
 0x21d   :  { %v271_v45 = vpop.xlane.xlu2 %270 }
 0x21e   :  { %v273_v46 = vsub.f32 %v265_v40, %v271_v45  ;;  %v412_v40 = vunpack.c.0.s8 %v410_v39 }
 0x220   :  { %v585_v47 = vpop.eup %584  ;;  %v276_v48 = vmul.f32 1.442695, %v273_v46  ;;  %vm998_vm15 = vcmp.ne.s32.totalorder %v412_v40, 0 }
 0x221   :  { %v278_v49 = vsel %vm954_vm7, %v585_v47, 0.0 }
 0x222   :  { %586 = vpow2.f32 %v276_v48  ;;  %v280_v50 = vsel %vm192_vm2, %v278_v49, 0.0 }
 0x223   :  { %281 = vadd.xlane.f32.xlu0 %v280_v50 }
 0x228   :  { %v587_v51 = vpop.eup %586 }
 0x229   :  { %v279_v52 = vsel %vm962_vm9, %v587_v51, 0.0 }
 0x22a   :  { %v283_v53 = vsel %vm192_vm2, %v279_v52, 0.0 }
 0x22b   :  { %284 = vadd.xlane.f32.xlu1 %v283_v53 }
 0x296   :  { %v282_v54 = vpop.xlane.xlu0 %281 }
 0x297   :  { %v286_v55 = vmax.f32 %v282_v54, 1e-20 }
 0x299   :  { %588 = vrcp.f32 %v286_v55 }
 0x29e   :  { %v285_v56 = vpop.xlane.xlu1 %284 }
 0x29f   :  { %v287_v57 = vmax.f32 %v285_v56, 1e-20  ;;  %v589_v58 = vpop.eup %588 }
 0x2a0   :  { %v290_v60 = vmul.f32 %v589_v58, %v278_v49 }
 0x2a1   :  { %590 = vrcp.f32 %v287_v57 }
 0x2a7   :  { %v591_v59 = vpop.eup %590 }
 0x2a8   :  { %v291_v61 = vmul.f32 %v591_v59, %v279_v52 }
 0x2aa   :  { %v292_v62 = vpack.c.bf16 %v291_v61, %v290_v60 }
 0x2ac   :  { %553 = vmatmul.msk.bf16.vlgmr.msra.gmra.mxu2 %vm192_vm2, %v292_v62 }
 0x32f   :  { %v308_v3 = vpop.f32.mrf.mxu2 }
 0x330   :  { %v309_v4 = vadd.f32 %v579_v2, %v308_v3 }
 0x332   :  { %v313_v5 = vmax.f32 %v309_v4, 0.0  ;;  %v469_v4 = vld [vmem:[#allocation15] sm:$0xff] }
 0x334   :  { %315 = vst.msk [vmem:[#allocation2] sm:$0xff] %vm192_vm2, %v313_v5  ;;  %v470_v5 = vld [vmem:[#allocation15 + $0x8] sm:$0xff] }
 0x337   :  { %v310_v6 = vpop.f32.mrf.mxu2 }
 0x338   :  { %v311_v7 = vadd.f32 %v579_v2, %v310_v6  ;;  %v471_v6 = vpack.c.bf16 %v470_v5, %v469_v4 }
 0x33a   :  { %v314_v8 = vmax.f32 %v311_v7, 0.0  ;;  %486 = vmatpush.bf16.msrb.mxu2 %v471_v6  ;;  %v498_v7 = vld [vmem:[%s1046_s10 + $0x10] sm:$0xff] }
 0x33b   :  { %v317_v9 = vld [vmem:[#allocation2] sm:$0xff] }
 0x33c   :  { %316 = vst.msk [vmem:[#allocation2 + $0x8] sm:$0xff] %vm192_vm2, %v314_v8  ;;  %v499_v8 = vld [vmem:[%s1046_s10 + $0x18] sm:$0xff] }
 0x343   :  { %v318_v10 = vld [vmem:[#allocation2 + $0x8] sm:$0xff] }
 0x344   :  { %v319_v11 = vpack.c.bf16 %v318_v10, %v317_v9  ;;  %v501_v9 = vpack.c.bf16 %v499_v8, %v498_v7  ;;  %v581_v10 = vld [vmem:[#allocation13] ss:$0 sm:$0xff] }
 0x346   :  { %554 = vmatmul.msk.bf16.vlgmr.msra.gmra.mxu3 %vm192_vm2, %v319_v11 }
 0x347   :  { %516 = vmatpush.bf16.msrb.mxu3 %v501_v9 }
 0x3c9   :  { %v335_v13 = vpop.f32.mrf.mxu3 }
 0x3ca   :  { %v343_v14 = vmul.f32 %v580_v12, %v335_v13 }
 0x3cc   :  { %v345_v16 = vsel %vm192_vm2, %v343_v14, 0.0 }
 0x3cd   :  { %346 = vadd.xlane.f32.xlu2 %v345_v16 }
 0x3d1   :  { %v337_v17 = vpop.f32.mrf.mxu3 }
 0x3d2   :  { %555 = vmatpush.xpose.msk.msrb.mxu1 %vm192_vm2, %v337_v17  ;;  %v380_v18 = vpack.c.bf16 %v337_v17, %v335_v13  ;;  %v344_v19 = vmul.f32 %v580_v12, %v337_v17 }
 0x3d4   :  { %457 = vmatpush.bf16.msrb.mxu0 %v380_v18  ;;  %v348_v20 = vsel %vm192_vm2, %v344_v19, 0.0  ;;  %v496_v19 = vld [vmem:[%s1046_s10] sm:$0xff] }
 0x3d5   :  { %349 = vadd.xlane.f32.xlu0 %v348_v20  ;;  %v497_v20 = vld [vmem:[%s1046_s10 + $0x8] sm:$0xff]  ;;  %s841_s10 = smov [#allocation18]  }
 0x3d6   :  { %556 = vmatpush.xpose.msk.msrb.mxu1 %vm192_vm2, %v335_v13  ;;  %s530_s16 = sshll.u32 %s841_s10, 4  ;;  %s531_s16 = int_to_ptr.vmem [resolvable:$true] %s530_s16 }
 0x3d9   :  { %557 = vmatmul.msk.f32.vlgmr.msrb.gmra.mxu1 %vm192_vm2, %v340_v21  ;;  %v500_v21 = vpack.c.bf16 %v497_v20, %v496_v19 }
 0x3db   :  { %517 = vmatpush.bf16.msrb.mxu3 %v500_v21 }
 0x440   :  { %v347_v22 = vpop.xlane.xlu2 %346 }
 0x441   :  { %381 = vst.msk [vmem:[#allocation3] sm:$0xff] %vm229_vm3, %v347_v22 }
 0x448   :  { %v350_v23 = vpop.xlane.xlu0 %349  ;;  %v388_v24 = vld [vmem:[#allocation3] sm:$0xff] }
 0x449   :  { %382 = vst.msk [vmem:[#allocation3 + $0x8] sm:$0xff] %vm229_vm3, %v350_v23  ;;  %392 = vperm.xlu2 %576, %v388_v24   ;;  %v582_v23 = vld [vmem:[#allocation16] ss:$0 sm:$0xff] }
 0x450   :  { %v389_v25 = vld [vmem:[#allocation3 + $0x8] sm:$0xff] }
 0x451   :  { %397 = vperm.xlu0 %577, %v389_v25  }
 0x456   :  { %v377_v27 = vpop.f32.mrf.mxu1 }
 0x457   :  { %v400_v29 = vperm.slane %v377_v27, 0 }
 0x4a3   :  { %v393_v31 = vpop.permute.xlu2 %392 }
 0x4a4   :  { %v401_v32 = vadd.f32 %v400_v29, %v393_v31 }
 0x4a6   :  { %v405_v33 = vmul.f32 0.2, %v401_v32  ;;  %vm403_vm11 = vcmp.gt.f32.partialorder %v401_v32, 0.0 }
 0x4a8   :  { %v407_v35 = vsel %vm403_vm11, %v401_v32, %v405_v33 }
 0x4a9   :  { %v415_v36 = vsel %vm990_vm12, %v407_v35, -1e+30 }
 0x4aa   :  { %v417_v37 = vsel %vm192_vm2, %v415_v36, -inf }
 0x4ab   :  { %418 = vmax.xlane.f32.xlu2 %v417_v37 }
 0x4c3   :  { %v398_v41 = vpop.permute.xlu0 %397 }
 0x4c4   :  { %v402_v42 = vadd.f32 %v400_v29, %v398_v41 }
 0x4c6   :  { %v406_v43 = vmul.f32 0.2, %v402_v42  ;;  %vm404_vm14 = vcmp.gt.f32.partialorder %v402_v42, 0.0 }
 0x4c8   :  { %v408_v45 = vsel %vm404_vm14, %v402_v42, %v406_v43 }
 0x4c9   :  { %v416_v46 = vsel %vm998_vm15, %v408_v45, -1e+30 }
 0x4ca   :  { %v420_v47 = vsel %vm192_vm2, %v416_v46, -inf }
 0x4cb   :  { %421 = vmax.xlane.f32.xlu1 %v420_v47 }
 0x51e   :  { %v419_v48 = vpop.xlane.xlu2 %418 }
 0x51f   :  { %v423_v49 = vsub.f32 %v415_v36, %v419_v48 }
 0x521   :  { %v425_v50 = vmul.f32 1.442695, %v423_v49 }
 0x523   :  { %592 = vpow2.f32 %v425_v50 }
 0x529   :  { %v593_v15 = vpop.eup %592 }
 0x52a   :  { %v429_v51 = vsel %vm990_vm12, %v593_v15, 0.0 }
 0x52b   :  { %v431_v52 = vsel %vm192_vm2, %v429_v51, 0.0 }
 0x52c   :  { %432 = vadd.xlane.f32.xlu1 %v431_v52 }
 0x53e   :  { %v422_v53 = vpop.xlane.xlu1 %421 }
 0x53f   :  { %v424_v54 = vsub.f32 %v416_v46, %v422_v53 }
 0x541   :  { %v427_v55 = vmul.f32 1.442695, %v424_v54 }
 0x543   :  { %594 = vpow2.f32 %v427_v55 }
 0x549   :  { %v595_v56 = vpop.eup %594 }
 0x54a   :  { %v430_v57 = vsel %vm998_vm15, %v595_v56, 0.0 }
 0x54b   :  { %v434_v58 = vsel %vm192_vm2, %v430_v57, 0.0 }
 0x54c   :  { %435 = vadd.xlane.f32.xlu0 %v434_v58 }
 0x59f   :  { %v433_v59 = vpop.xlane.xlu1 %432 }
 0x5a0   :  { %v437_v60 = vmax.f32 %v433_v59, 1e-20 }
 0x5a2   :  { %596 = vrcp.f32 %v437_v60 }
 0x5a8   :  { %v597_v63 = vpop.eup %596 }
 0x5a9   :  { %v441_v1 = vmul.f32 %v597_v63, %v429_v51 }
 0x5bf   :  { %v436_v61 = vpop.xlane.xlu0 %435 }
 0x5c0   :  { %v438_v62 = vmax.f32 %v436_v61, 1e-20 }
 0x5c2   :  { %598 = vrcp.f32 %v438_v62 }
 0x5c8   :  { %v599_v0 = vpop.eup %598 }
 0x5c9   :  { %v442_v2 = vmul.f32 %v599_v0, %v430_v57 }
 0x5cb   :  { %v443_v3 = vpack.c.bf16 %v442_v2, %v441_v1 }
 0x5cd   :  { %558 = vmatmul.msk.bf16.vlgmr.msrb.gmra.mxu0 %vm192_vm2, %v443_v3 }
 0x64a   :  { %v459_v11 = vpop.f32.mrf.mxu0 }
 0x64b   :  { %v460_v12 = vadd.f32 %v581_v10, %v459_v11 }
 0x64d   :  { %464 = vst.msk [vmem:[#allocation2] sm:$0xff] %vm192_vm2, %v460_v12 }
 0x652   :  { %v461_v13 = vpop.f32.mrf.mxu0 }
 0x653   :  { %v462_v14 = vadd.f32 %v581_v10, %v461_v13 }
 0x654   :  { %v466_v16 = vld [vmem:[#allocation2] sm:$0xff] }
 0x655   :  { %465 = vst.msk [vmem:[#allocation2 + $0x8] sm:$0xff] %vm192_vm2, %v462_v14 }
 0x65c   :  { %v467_v17 = vld [vmem:[#allocation2 + $0x8] sm:$0xff] }
 0x65d   :  { %v468_v18 = vpack.c.bf16 %v467_v17, %v466_v16 }
 0x65f   :  { %559 = vmatmul.msk.bf16.vlgmr.msrb.gmra.mxu2 %vm192_vm2, %v468_v18 }
 0x6e2   :  { %v488_v22 = vpop.f32.mrf.mxu2 }
 0x6e3   :  { %v489_v24 = vadd.f32 %v582_v23, %v488_v22 }
 0x6e5   :  { %v493_v27 = vmax.f32 %v489_v24, 0.0 }
 0x6ea   :  { %v490_v25 = vpop.f32.mrf.mxu2 }
 0x6eb   :  { %v491_v26 = vadd.f32 %v582_v23, %v490_v25 }
 0x6ed   :  { %v494_v28 = vmax.f32 %v491_v26, 0.0 }
 0x6ef   :  { %v495_v29 = vpack.c.bf16 %v494_v28, %v493_v27 }
 0x6f1   :  { %560 = vmatmul.msk.bf16.vlgmr.msrb.gmra.mxu3 %vm506_vm0, %v495_v29 }
 0x774   :  { %v519_v31 = vpop.f32.mrf.mxu3 }
 0x775   :  { %v520_v32 = vadd.f32 %v583_v30, %v519_v31 }
 0x777   :  { %524 = vst [vmem:[#allocation18] sm:$0xff] %v520_v32 }
 0x77c   :  { %v521_v33 = vpop.f32.mrf.mxu3 }
 0x77d   :  { %v522_v34 = vadd.f32 %v583_v30, %v521_v33 }
 0x77f   :  { %525 = vst [vmem:[#allocation18 + $0x8] sm:$0xff] %v522_v34 }
 0x780   :  { %538 = dma.vmem_to_hbm [thread:$0]  %s531_s16, 256, %s533_s3, [#allocation6], %s830_s13, %s830_s13, %s831_s14  }
 0x781   :  { %826 = dma.done.wait [#allocation6], 256  }
 0x782   :  { %827 = vsyncadd [#allocation6], 4294967040 }
 0x783   :  { %543 = vsyncpa [#allocation5], 1 }
 0x784   :  { %544 = vsyncpa [#allocation8], 1 }
 0x785   :  { %545 = vsyncpa [#allocation11], 1 }
 0x786   :  { %546 = vsyncpa [#allocation14], 1 }
 0x787   :  { %547 = vsyncpa [#allocation17], 1 }
 0x788   :  { %548 = vsyncpa [#allocation6], 1 }

</bundles_post_ra>
